<compile_context>
chip_gen: v5e
topology: v5e:2x2
jax: 0.10.0
libtpu: 0.0.40
codegen_flags: <defaults>
</compile_context>

<pallas_src>
import functools

import jax
import jax.numpy as jnp
from jax.experimental import pallas as pl
from jax.experimental.pallas import tpu as pltpu

_EPS = 1e-5


def _bf16_vpu_ok():
    """bf16 VALU exists on v6e/v7x; v5e and older lack it."""
    try:
        kind = jax.devices()[0].device_kind.lower()
    except Exception:
        return False
    return ("v6" in kind) or ("v7" in kind)


def _bn_relu(h, gamma, beta, apply_bf16):
    """Fused training-mode BatchNorm1d + ReLU.

    h: (N, F) f32 (matmul output); gamma/beta: (1, F) f32.
    Statistics in f32; the elementwise apply is bf16 on parts with a bf16 VPU.
    Returns bf16 (ready to feed the next MXU matmul).
    """
    mu = jnp.mean(h, axis=0, keepdims=True)                          # (1, F)
    var = jnp.mean(h * h, axis=0, keepdims=True) - mu * mu           # biased var
    var = jnp.maximum(var, 0.0)                                      # clamp: f32 cancellation
    s = gamma * jax.lax.rsqrt(var + _EPS)                            # (1, F), EUP rsqrt
    shift = beta - mu * s                                            # (1, F)
    if apply_bf16:
        hb = h.astype(jnp.bfloat16)
        return jnp.maximum(hb * s.astype(jnp.bfloat16) + shift.astype(jnp.bfloat16), 0.0)
    return jnp.maximum(h * s + shift, 0.0).astype(jnp.bfloat16)


def mlp_kernel(x_ref, w1_ref, wp_ref, bn_ref, out_ref, *, apply_bf16):
    bn = bn_ref[...]                                                 # (8, 64) f32
    x = x_ref[...].astype(jnp.bfloat16)                              # (N, 11)

    # fc1/fc2/fc3 biases omitted: cancelled exactly by BN mean subtraction.
    h = jnp.dot(x, w1_ref[...], preferred_element_type=jnp.float32)
    h = _bn_relu(h, bn[0:1], bn[1:2], apply_bf16)                    # (N, 64) bf16

    h = jnp.dot(h, wp_ref[0], preferred_element_type=jnp.float32)
    h = _bn_relu(h, bn[2:3], bn[3:4], apply_bf16)

    h = jnp.dot(h, wp_ref[1], preferred_element_type=jnp.float32)
    h = _bn_relu(h, bn[4:5], bn[5:6], apply_bf16)

    # w4 is zero-padded to (64, 64); b4 (zero-padded) is bn row 6.
    out = jnp.dot(h, wp_ref[2], preferred_element_type=jnp.float32) + bn[6:7]
    out_ref[...] = out[:, :2].astype(out_ref.dtype)                  # (N, 2)


def _vmem_limit_bytes(n):
    # A handful of lane-padded (N, 128) activation/temp buffers + ~30 KB of
    # packed weights + Mosaic internal scratch headroom.  No artificial floor;
    # clamp at 32 MiB so we stay well inside v7x's 64 MiB/TC physical VMEM.
    rows = max(n, 8)
    est = 4 * rows * 128 * 8 + 512 * 1024
    return int(min(max(est, 1 << 20), 32 << 20))


def pack_params(params):
    """One-time parameter packing/casting (hoisted out of the forward)."""
    w1 = params["w1"].astype(jnp.bfloat16)                           # (11, 64)
    w4p = jnp.zeros((64, 64), jnp.float32).at[:, :2].set(params["w4"])
    wpack = jnp.stack([params["w2"], params["w3"], w4p]).astype(jnp.bfloat16)  # (3,64,64)
    b4p = jnp.zeros((1, 64), jnp.float32).at[:, :2].set(params["b4"])
    bn = jnp.concatenate(
        [params["g1"], params["bt1"],
         params["g2"], params["bt2"],
         params["g3"], params["bt3"],
         b4p, jnp.zeros((1, 64), jnp.float32)], axis=0).astype(jnp.float32)    # (8, 64)
    return w1, wpack, bn


def net_forward(x, packed):
    """x: (N, 11) float32 (bf16 also fine). packed: output of pack_params."""
    w1, wpack, bn = packed
    n = x.shape[0]
    apply_bf16 = _bf16_vpu_ok()

    cost = pl.CostEstimate(
        flops=2 * n * (11 * 64 + 64 * 64 + 64 * 64 + 64 * 2),
        transcendentals=3 * 64,
        bytes_accessed=(x.dtype.itemsize * n * 11 + 2 * (11 * 64 + 3 * 64 * 64)
                        + 4 * 8 * 64 + 4 * n * 2),
    )
    vmem = pl.BlockSpec(memory_space=pltpu.MemorySpace.VMEM)
    return pl.pallas_call(
        functools.partial(mlp_kernel, apply_bf16=apply_bf16),
        out_shape=jax.ShapeDtypeStruct((n, 2), jnp.float32),
        in_specs=[vmem] * 4,
        out_specs=vmem,
        compiler_params=pltpu.CompilerParams(
            vmem_limit_bytes=_vmem_limit_bytes(n)),
        cost_estimate=cost,
    )(x, w1, wpack, bn)


def init_params(key):
    """Deterministic synthetic parameters (shapes from Net.__init__)."""
    ks = jax.random.split(key, 12)

    def lin(kw, kb, fan_in, fan_out):
        bound = 1.0 / jnp.sqrt(fan_in)
        w = jax.random.uniform(kw, (fan_in, fan_out), jnp.float32, -bound, bound)
        b = jax.random.uniform(kb, (1, fan_out), jnp.float32, -bound, bound)
        return w, b

    p = {}
    p["w1"], p["b1"] = lin(ks[0], ks[1], 11, 64)
    p["w2"], p["b2"] = lin(ks[2], ks[3], 64, 64)
    p["w3"], p["b3"] = lin(ks[4], ks[5], 64, 64)
    p["w4"], p["b4"] = lin(ks[6], ks[7], 64, 2)
    # BatchNorm1d affine params (perturbed so the affine path is exercised).
    p["g1"] = 1.0 + 0.1 * jax.random.normal(ks[8], (1, 64), jnp.float32)
    p["bt1"] = 0.1 * jax.random.normal(ks[9], (1, 64), jnp.float32)
    p["g2"] = 1.0 + 0.1 * jax.random.normal(ks[10], (1, 64), jnp.float32)
    p["bt2"] = 0.1 * jax.random.normal(ks[11], (1, 64), jnp.float32)
    k2 = jax.random.split(jax.random.fold_in(key, 7), 2)
    p["g3"] = 1.0 + 0.1 * jax.random.normal(k2[0], (1, 64), jnp.float32)
    p["bt3"] = 0.1 * jax.random.normal(k2[1], (1, 64), jnp.float32)
    return p


def reference_forward(x, p):
    """Pure-JAX f32 reference of the PyTorch forward (with Linear biases)."""
    def bn_relu(h, g, b):
        mu = jnp.mean(h, axis=0, keepdims=True)
        var = jnp.mean((h - mu) ** 2, axis=0, keepdims=True)
        return jnp.maximum((h - mu) / jnp.sqrt(var + _EPS) * g + b, 0.0)
    h = bn_relu(x @ p["w1"] + p["b1"], p["g1"], p["bt1"])
    h = bn_relu(h @ p["w2"] + p["b2"], p["g2"], p["bt2"])
    h = bn_relu(h @ p["w3"] + p["b3"], p["g3"], p["bt3"])
    return h @ p["w4"] + p["b4"]


if __name__ == "__main__":
    key = jax.random.PRNGKey(0)
    k_x, k_p = jax.random.split(key)

    N = 8                                   # small batch (BatchNorm needs N > 1)
    x = jax.random.normal(k_x, (N, 11), jnp.float32)
    params = init_params(k_p)
    packed = jax.tree.map(jax.block_until_ready, pack_params(params))  # hoisted, once

    out = jax.block_until_ready(net_forward(x, packed))
    ref = reference_forward(x, params)

    assert out.shape == (N, 2)
    # bf16 matmul inputs / bf16 BN apply (f32 stats & accumulation) => loosened
    # tolerance vs the pure-f32 reference.
    assert jnp.allclose(out, ref, atol=5e-2, rtol=5e-2), "mismatch vs reference"

    print("KERNEL_OK")
</pallas_src>

<mosaic_0001>
module attributes {stable_mosaic.version = 11 : i64} {
  func.func @mlp_kernel(%arg0: memref<8x11xf32, #tpu.memory_space<vmem>>, %arg1: memref<11x64xbf16, #tpu.memory_space<vmem>>, %arg2: memref<3x64x64xbf16, #tpu.memory_space<vmem>>, %arg3: memref<8x64xf32, #tpu.memory_space<vmem>>, %arg4: memref<8x2xf32, #tpu.memory_space<vmem>>) attributes {dimension_semantics = [], scalar_prefetch = 0 : i64, scratch_operands = 0 : i64, tpu.core_type = #tpu.core_type<tc>} {
    %c0 = arith.constant 0 : index
    %c0_0 = arith.constant 0 : index
    %0 = vector.load %arg3[%c0, %c0_0] : memref<8x64xf32, #tpu.memory_space<vmem>>, vector<8x64xf32>
    %c0_1 = arith.constant 0 : index
    %c0_2 = arith.constant 0 : index
    %1 = vector.load %arg0[%c0_1, %c0_2] : memref<8x11xf32, #tpu.memory_space<vmem>>, vector<8x11xf32>
    %2 = arith.truncf %1 : vector<8x11xf32> to vector<8x11xbf16>
    %c0_3 = arith.constant 0 : index
    %c0_4 = arith.constant 0 : index
    %3 = vector.load %arg1[%c0_3, %c0_4] : memref<11x64xbf16, #tpu.memory_space<vmem>>, vector<11x64xbf16>
    %cst = arith.constant dense<0.000000e+00> : vector<8x64xf32>
    %4 = tpu.matmul %2, %3, %cst {dimension_numbers = #tpu.dot_dimension_numbers<[1], [0], [0], [1], [0, 0, 1, 1], [], []>} : vector<8x11xbf16>, vector<11x64xbf16>, vector<8x64xf32> -> vector<8x64xf32>
    %5 = vector.extract_strided_slice %0 {offsets = [0, 0], sizes = [1, 64], strides = [1, 1]} : vector<8x64xf32> to vector<1x64xf32>
    %6 = vector.extract_strided_slice %0 {offsets = [1, 0], sizes = [1, 64], strides = [1, 1]} : vector<8x64xf32> to vector<1x64xf32>
    %cst_5 = arith.constant dense<0.000000e+00> : vector<64xf32>
    %7 = vector.multi_reduction <add>, %4, %cst_5 [0] : vector<8x64xf32> to vector<64xf32>
    %8 = vector.shape_cast %7 : vector<64xf32> to vector<1x64xf32>
    %cst_6 = arith.constant 8.000000e+00 : f32
    %9 = vector.broadcast %cst_6 : f32 to vector<1x64xf32>
    %10 = arith.divf %8, %9 : vector<1x64xf32>
    %11 = arith.mulf %4, %4 : vector<8x64xf32>
    %cst_7 = arith.constant dense<0.000000e+00> : vector<64xf32>
    %12 = vector.multi_reduction <add>, %11, %cst_7 [0] : vector<8x64xf32> to vector<64xf32>
    %13 = vector.shape_cast %12 : vector<64xf32> to vector<1x64xf32>
    %cst_8 = arith.constant 8.000000e+00 : f32
    %14 = vector.broadcast %cst_8 : f32 to vector<1x64xf32>
    %15 = arith.divf %13, %14 : vector<1x64xf32>
    %16 = arith.mulf %10, %10 : vector<1x64xf32>
    %17 = arith.subf %15, %16 : vector<1x64xf32>
    %cst_9 = arith.constant 0.000000e+00 : f32
    %18 = vector.broadcast %cst_9 : f32 to vector<1x64xf32>
    %19 = arith.maximumf %17, %18 : vector<1x64xf32>
    %cst_10 = arith.constant 9.99999974E-6 : f32
    %20 = vector.broadcast %cst_10 : f32 to vector<1x64xf32>
    %21 = arith.addf %19, %20 : vector<1x64xf32>
    %22 = math.rsqrt %21 : vector<1x64xf32>
    %23 = arith.mulf %5, %22 : vector<1x64xf32>
    %24 = arith.mulf %10, %23 : vector<1x64xf32>
    %25 = arith.subf %6, %24 : vector<1x64xf32>
    %26 = vector.broadcast %23 : vector<1x64xf32> to vector<8x64xf32>
    %27 = arith.mulf %4, %26 : vector<8x64xf32>
    %28 = vector.broadcast %25 : vector<1x64xf32> to vector<8x64xf32>
    %29 = arith.addf %27, %28 : vector<8x64xf32>
    %cst_11 = arith.constant 0.000000e+00 : f32
    %30 = vector.broadcast %cst_11 : f32 to vector<8x64xf32>
    %31 = arith.maximumf %29, %30 : vector<8x64xf32>
    %32 = arith.truncf %31 : vector<8x64xf32> to vector<8x64xbf16>
    %c0_12 = arith.constant 0 : index
    %c0_13 = arith.constant 0 : index
    %c0_14 = arith.constant 0 : index
    %33 = vector.load %arg2[%c0_12, %c0_13, %c0_14] : memref<3x64x64xbf16, #tpu.memory_space<vmem>>, vector<1x64x64xbf16>
    %34 = vector.shape_cast %33 : vector<1x64x64xbf16> to vector<64x64xbf16>
    %cst_15 = arith.constant dense<0.000000e+00> : vector<8x64xf32>
    %35 = tpu.matmul %32, %34, %cst_15 {dimension_numbers = #tpu.dot_dimension_numbers<[1], [0], [0], [1], [0, 0, 1, 1], [], []>} : vector<8x64xbf16>, vector<64x64xbf16>, vector<8x64xf32> -> vector<8x64xf32>
    %36 = vector.extract_strided_slice %0 {offsets = [2, 0], sizes = [1, 64], strides = [1, 1]} : vector<8x64xf32> to vector<1x64xf32>
    %37 = vector.extract_strided_slice %0 {offsets = [3, 0], sizes = [1, 64], strides = [1, 1]} : vector<8x64xf32> to vector<1x64xf32>
    %cst_16 = arith.constant dense<0.000000e+00> : vector<64xf32>
    %38 = vector.multi_reduction <add>, %35, %cst_16 [0] : vector<8x64xf32> to vector<64xf32>
    %39 = vector.shape_cast %38 : vector<64xf32> to vector<1x64xf32>
    %cst_17 = arith.constant 8.000000e+00 : f32
    %40 = vector.broadcast %cst_17 : f32 to vector<1x64xf32>
    %41 = arith.divf %39, %40 : vector<1x64xf32>
    %42 = arith.mulf %35, %35 : vector<8x64xf32>
    %cst_18 = arith.constant dense<0.000000e+00> : vector<64xf32>
    %43 = vector.multi_reduction <add>, %42, %cst_18 [0] : vector<8x64xf32> to vector<64xf32>
    %44 = vector.shape_cast %43 : vector<64xf32> to vector<1x64xf32>
    %cst_19 = arith.constant 8.000000e+00 : f32
    %45 = vector.broadcast %cst_19 : f32 to vector<1x64xf32>
    %46 = arith.divf %44, %45 : vector<1x64xf32>
    %47 = arith.mulf %41, %41 : vector<1x64xf32>
    %48 = arith.subf %46, %47 : vector<1x64xf32>
    %cst_20 = arith.constant 0.000000e+00 : f32
    %49 = vector.broadcast %cst_20 : f32 to vector<1x64xf32>
    %50 = arith.maximumf %48, %49 : vector<1x64xf32>
    %cst_21 = arith.constant 9.99999974E-6 : f32
    %51 = vector.broadcast %cst_21 : f32 to vector<1x64xf32>
    %52 = arith.addf %50, %51 : vector<1x64xf32>
    %53 = math.rsqrt %52 : vector<1x64xf32>
    %54 = arith.mulf %36, %53 : vector<1x64xf32>
    %55 = arith.mulf %41, %54 : vector<1x64xf32>
    %56 = arith.subf %37, %55 : vector<1x64xf32>
    %57 = vector.broadcast %54 : vector<1x64xf32> to vector<8x64xf32>
    %58 = arith.mulf %35, %57 : vector<8x64xf32>
    %59 = vector.broadcast %56 : vector<1x64xf32> to vector<8x64xf32>
    %60 = arith.addf %58, %59 : vector<8x64xf32>
    %cst_22 = arith.constant 0.000000e+00 : f32
    %61 = vector.broadcast %cst_22 : f32 to vector<8x64xf32>
    %62 = arith.maximumf %60, %61 : vector<8x64xf32>
    %63 = arith.truncf %62 : vector<8x64xf32> to vector<8x64xbf16>
    %c1 = arith.constant 1 : index
    %c0_23 = arith.constant 0 : index
    %c0_24 = arith.constant 0 : index
    %64 = vector.load %arg2[%c1, %c0_23, %c0_24] : memref<3x64x64xbf16, #tpu.memory_space<vmem>>, vector<1x64x64xbf16>
    %65 = vector.shape_cast %64 : vector<1x64x64xbf16> to vector<64x64xbf16>
    %cst_25 = arith.constant dense<0.000000e+00> : vector<8x64xf32>
    %66 = tpu.matmul %63, %65, %cst_25 {dimension_numbers = #tpu.dot_dimension_numbers<[1], [0], [0], [1], [0, 0, 1, 1], [], []>} : vector<8x64xbf16>, vector<64x64xbf16>, vector<8x64xf32> -> vector<8x64xf32>
    %67 = vector.extract_strided_slice %0 {offsets = [4, 0], sizes = [1, 64], strides = [1, 1]} : vector<8x64xf32> to vector<1x64xf32>
    %68 = vector.extract_strided_slice %0 {offsets = [5, 0], sizes = [1, 64], strides = [1, 1]} : vector<8x64xf32> to vector<1x64xf32>
    %cst_26 = arith.constant dense<0.000000e+00> : vector<64xf32>
    %69 = vector.multi_reduction <add>, %66, %cst_26 [0] : vector<8x64xf32> to vector<64xf32>
    %70 = vector.shape_cast %69 : vector<64xf32> to vector<1x64xf32>
    %cst_27 = arith.constant 8.000000e+00 : f32
    %71 = vector.broadcast %cst_27 : f32 to vector<1x64xf32>
    %72 = arith.divf %70, %71 : vector<1x64xf32>
    %73 = arith.mulf %66, %66 : vector<8x64xf32>
    %cst_28 = arith.constant dense<0.000000e+00> : vector<64xf32>
    %74 = vector.multi_reduction <add>, %73, %cst_28 [0] : vector<8x64xf32> to vector<64xf32>
    %75 = vector.shape_cast %74 : vector<64xf32> to vector<1x64xf32>
    %cst_29 = arith.constant 8.000000e+00 : f32
    %76 = vector.broadcast %cst_29 : f32 to vector<1x64xf32>
    %77 = arith.divf %75, %76 : vector<1x64xf32>
    %78 = arith.mulf %72, %72 : vector<1x64xf32>
    %79 = arith.subf %77, %78 : vector<1x64xf32>
    %cst_30 = arith.constant 0.000000e+00 : f32
    %80 = vector.broadcast %cst_30 : f32 to vector<1x64xf32>
    %81 = arith.maximumf %79, %80 : vector<1x64xf32>
    %cst_31 = arith.constant 9.99999974E-6 : f32
    %82 = vector.broadcast %cst_31 : f32 to vector<1x64xf32>
    %83 = arith.addf %81, %82 : vector<1x64xf32>
    %84 = math.rsqrt %83 : vector<1x64xf32>
    %85 = arith.mulf %67, %84 : vector<1x64xf32>
    %86 = arith.mulf %72, %85 : vector<1x64xf32>
    %87 = arith.subf %68, %86 : vector<1x64xf32>
    %88 = vector.broadcast %85 : vector<1x64xf32> to vector<8x64xf32>
    %89 = arith.mulf %66, %88 : vector<8x64xf32>
    %90 = vector.broadcast %87 : vector<1x64xf32> to vector<8x64xf32>
    %91 = arith.addf %89, %90 : vector<8x64xf32>
    %cst_32 = arith.constant 0.000000e+00 : f32
    %92 = vector.broadcast %cst_32 : f32 to vector<8x64xf32>
    %93 = arith.maximumf %91, %92 : vector<8x64xf32>
    %94 = arith.truncf %93 : vector<8x64xf32> to vector<8x64xbf16>
    %c2 = arith.constant 2 : index
    %c0_33 = arith.constant 0 : index
    %c0_34 = arith.constant 0 : index
    %95 = vector.load %arg2[%c2, %c0_33, %c0_34] : memref<3x64x64xbf16, #tpu.memory_space<vmem>>, vector<1x64x64xbf16>
    %96 = vector.shape_cast %95 : vector<1x64x64xbf16> to vector<64x64xbf16>
    %cst_35 = arith.constant dense<0.000000e+00> : vector<8x64xf32>
    %97 = tpu.matmul %94, %96, %cst_35 {dimension_numbers = #tpu.dot_dimension_numbers<[1], [0], [0], [1], [0, 0, 1, 1], [], []>} : vector<8x64xbf16>, vector<64x64xbf16>, vector<8x64xf32> -> vector<8x64xf32>
    %98 = vector.extract_strided_slice %0 {offsets = [6, 0], sizes = [1, 64], strides = [1, 1]} : vector<8x64xf32> to vector<1x64xf32>
    %99 = vector.broadcast %98 : vector<1x64xf32> to vector<8x64xf32>
    %100 = arith.addf %97, %99 : vector<8x64xf32>
    %101 = vector.extract_strided_slice %100 {offsets = [0, 0], sizes = [8, 2], strides = [1, 1]} : vector<8x64xf32> to vector<8x2xf32>
    %c0_36 = arith.constant 0 : index
    %c0_37 = arith.constant 0 : index
    %102 = vector.load %arg4[%c0_36, %c0_37] : memref<8x2xf32, #tpu.memory_space<vmem>>, vector<8x2xf32>
    tpu.vector_store %arg4[%c0_36, %c0_37], %101 {strides = array<i32>} : memref<8x2xf32, #tpu.memory_space<vmem>>, vector<8x2xf32>,
    return
  }
}

</mosaic_0001>

<bundles_post_ra>
// kernel: tpu_custom_call.1
= control target key start
LH: loop header
LB: loop body
LE: loop exit
PB: predicated region body
PF: predicated region fallthrough
CT: control target
= control target key end

     0   :  { %9 = vsyncpa [#allocation3], 0  ;;  %s665_s0 = inlined_call_operand.hbm [shape: f32[8,11], index: 0, kind: input, shape index: {}]   ;;  %s666_s1 = inlined_call_operand.hbm [shape: bf16[11,64], index: 1, kind: input, shape index: {}]   ;;  %s667_s2 = inlined_call_operand.hbm [shape: bf16[3,64,64], index: 2, kind: input, shape index: {}]   ;;  %s668_s3 = inlined_call_operand.hbm [shape: f32[8,64], index: 3, kind: input, shape index: {}]   ;;  %s669_s4 = inlined_call_operand.vmem [shape: f32[8,2], index: 4, kind: output, shape index: {}]  }
   0x1   :  { %10 = vsyncpa [#allocation5], 0  ;;  %s27_s17 = sshll.u32 %s666_s1, 4  ;;  %s28_s17 = int_to_ptr.hbm [resolvable:$true] %s27_s17 }
   0x2   :  { %11 = vsyncpa [#allocation8], 0  ;;  %s591_s18 = smov [#allocation4]   ;;  %s17_s22 = sshll.u32 %s665_s0, 4  ;;  %s18_s22 = int_to_ptr.hbm [resolvable:$true] %s17_s22 }
   0x3   :  { %s29_s19 = sshll.u32 %s591_s18, 4  ;;  %s592_s23 = smov 64   ;;  %s30_s19 = int_to_ptr.vmem [resolvable:$true] %s29_s19 }
   0x4   :  { %s593_s24 = smov 4   ;;  %s594_s25 = smov [#allocation2]  }
   0x5   :  { %35 = dma.hbm_to_vmem [thread:$0]  %s28_s17, 128, %s30_s19, [#allocation5], %s592_s23, %s592_s23, %s593_s24  }
   0x6   :  { %s19_s26 = sshll.u32 %s594_s25, 4  ;;  %s40_s29 = sshll.u32 %s667_s2, 4  ;;  %s20_s26 = int_to_ptr.vmem [resolvable:$true] %s19_s26  ;;  %s41_s29 = int_to_ptr.hbm [resolvable:$true] %s40_s29 }
   0x7   :  { %22 = dma.hbm_to_vmem [thread:$0]  %s18_s22, 128, %s20_s26, [#allocation3]  }
   0x8   :  { %s54_s5 = sshll.u32 %s668_s3, 4  ;;  %s595_s6 = smov [#allocation6]   ;;  %s55_s5 = int_to_ptr.hbm [resolvable:$true] %s54_s5 }
   0x9   :  { %s42_s7 = sshll.u32 %s595_s6, 4  ;;  %s596_s0 = smov [#allocation7]   ;;  %s43_s7 = int_to_ptr.vmem [resolvable:$true] %s42_s7 }
   0xa   :  { %48 = dma.hbm_to_vmem [thread:$0]  %s41_s29, 1536, %s43_s7, [#allocation5], %s592_s23, %s592_s23, %s593_s24  }
   0xb   :  { %s56_s8 = sshll.u32 %s596_s0, 4  ;;  %s57_s8 = int_to_ptr.vmem [resolvable:$true] %s56_s8 }
   0xc   :  { %59 = dma.hbm_to_vmem [thread:$0]  %s55_s5, 128, %s57_s8, [#allocation8]  }
   0xd   :  { %585 = dma.done.wait [#allocation3], 128  }
   0xe   :  { %586 = vsyncadd [#allocation3], 4294967168 }
   0xf   :  { %587 = dma.done.wait [#allocation5], 1664  }
  0x10   :  { %588 = vsyncadd [#allocation5], 4294965632 }
  0x11   :  { %589 = dma.done.wait [#allocation8], 128  }
  0x12   :  { %590 = vsyncadd [#allocation8], 4294967168  ;;  %vm91_vm0 = vcmask 1044480   ;;  %vm92_vm1 = vcmask 1045504   ;;  %v597_v0 = vmov 65535   ;;  %v78_v6 = vld [vmem:[#allocation2] sm:$0xff] }
  0x13   :  { %v93_v1 = vsel %vm91_vm0, 4294967295, %v597_v0  ;;  %v406_v2 = vld [vmem:[#allocation4] sm:$0xf]  ;;  %v460_v3 = vld [vmem:[#allocation4] sm:$0x30]  ;;  %v79_v8 = vpack.c.bf16 %v78_v6, %v78_v6  ;;  %vm87_vm2 = vcmask 89088  }
  0x14   :  { %v94_v4 = vsel %vm92_vm1, %v93_v1, 0  ;;  %v407_v5 = vor.u32 %v460_v3, %v406_v2  ;;  %v598_v9 = vmov 8.0   ;;  %vm111_vm3 = vcmask 523264   ;;  %v464_v27 = vld [vmem:[#allocation6 + $0x18] sm:$0xff]  ;;  %v463_v33 = vld [vmem:[#allocation6 + $0x10] sm:$0xff]  ;;  %v462_v36 = vld [vmem:[#allocation6 + $0x8] sm:$0xff] }
  0x15   :  { %481 = vrcp.f32 %v598_v9  ;;  %201 = vmatpush.bf16.msra.mxu1 %v464_v27  ;;  %v461_v40 = vld [vmem:[#allocation6] sm:$0xff]  ;;  %v468_v9 = vld [vmem:[#allocation6 + $0x38] sm:$0xff]  ;;  %vm395_vm14 = vcmask 15360  }
  0x16   :  { %v96_v7 = vand.u32 %v407_v5, %v94_v4  ;;  %v642_v48 = vld [vmem:[#allocation7] sm:$0xff]  ;;  %293 = vmatpush.bf16.msra.mxu2 %v468_v9 }
  0x18   :  { %105 = vmatpush.bf16.msra.mxu0 %v96_v7 }
  0x19   :  { %202 = vmatpush.bf16.msra.mxu1 %v463_v33 }
  0x1b   :  { %408 = vmatmul.msk.bf16.vlgmr.msra.gmra.mxu0 %vm87_vm2, %v79_v8  ;;  %v482_v10 = vpop.eup %481 }
  0x1c   :  { %v120_v11 = vmul.f32 8.0, %v482_v10  ;;  %vm124_vm4 = vweird.f32 %v482_v10 }
  0x1d   :  { %203 = vmatpush.bf16.msra.mxu1 %v462_v36 }
  0x1e   :  { %v121_v12 = vsub.f32 1.0, %v120_v11 }
  0x20   :  { %v122_v17 = vmul.f32 %v482_v10, %v121_v12 }
  0x21   :  { %204 = vmatpush.bf16.msra.mxu1 %v461_v40 }
  0x22   :  { %v123_v23 = vadd.f32 %v482_v10, %v122_v17  ;;  %v466_v17 = vld [vmem:[#allocation6 + $0x28] sm:$0xff] }
  0x24   :  { %v638_v30 = vsel %vm124_vm4, %v482_v10, %v123_v23 }
  0x98   :  { %v107_v13 = vpop.f32.mrf.mxu0 }
  0x99   :  { %v112_v14 = vsel %vm111_vm3, %v107_v13, 0.0  ;;  %v127_v15 = vmul.f32 %v107_v13, %v107_v13 }
  0x9a   :  { %v113_v16 = vrot.slane %v112_v14, 4 }
  0x9b   :  { %v128_v18 = vsel %vm111_vm3, %v127_v15, 0.0 }
  0x9c   :  { %v114_v19 = vadd.f32 %v113_v16, %v112_v14  ;;  %v129_v20 = vrot.slane %v128_v18, 4  ;;  %v467_v14 = vld [vmem:[#allocation6 + $0x30] sm:$0xff] }
  0x9d   :  { %294 = vmatpush.bf16.msra.mxu2 %v467_v14 }
  0x9e   :  { %v115_v21 = vrot.slane %v114_v19, 2  ;;  %v130_v22 = vadd.f32 %v129_v20, %v128_v18 }
  0xa0   :  { %v116_v24 = vadd.f32 %v115_v21, %v114_v19  ;;  %v131_v25 = vrot.slane %v130_v22, 2  ;;  %v109_v26 = vpop.f32.mrf.mxu0  ;;  %v465_v21 = vld [vmem:[#allocation6 + $0x20] sm:$0xff] }
  0xa1   :  { %295 = vmatpush.bf16.msra.mxu2 %v466_v17 }
  0xa2   :  { %v117_v28 = vrot.slane %v116_v24, 1  ;;  %v132_v29 = vadd.f32 %v131_v25, %v130_v22 }
  0xa4   :  { %v118_v31 = vadd.f32 %v117_v28, %v116_v24  ;;  %v133_v32 = vrot.slane %v132_v29, 1 }
  0xa5   :  { %296 = vmatpush.bf16.msra.mxu2 %v465_v21 }
  0xa6   :  { %v126_v34 = vmul.f32 %v638_v30, %v118_v31  ;;  %v134_v35 = vadd.f32 %v133_v32, %v132_v29 }
  0xa8   :  { %v135_v37 = vmul.f32 %v134_v35, %v638_v30  ;;  %v136_v38 = vmul.f32 %v126_v34, %v126_v34 }
  0xaa   :  { %v137_v39 = vsub.f32 %v135_v37, %v136_v38 }
  0xac   :  { %v138_v41 = vmax.f32 %v137_v39, 0.0 }
  0xae   :  { %v139_v42 = vadd.f32 1e-05, %v138_v41 }
  0xb0   :  { %483 = vrsqrt.f32 %v139_v42  ;;  %vm146_vm6 = vweird.f32 %v139_v42 }
  0xb6   :  { %v484_v43 = vpop.eup %483 }
  0xb7   :  { %v141_v44 = vmul.f32 %v484_v43, %v139_v42  ;;  %vm147_vm5 = vweird.f32 %v484_v43 }
  0xb8   :  { %vm148_vm7 = vmor %vm146_vm6, %vm147_vm5 }
  0xb9   :  { %v142_v45 = vmul.f32 %v484_v43, %v141_v44 }
  0xbb   :  { %v143_v46 = vmul.f32 0.5, %v142_v45 }
  0xbd   :  { %v144_v47 = vsub.f32 1.5, %v143_v46 }
  0xbf   :  { %v145_v49 = vmul.f32 %v484_v43, %v144_v47 }
  0xc1   :  { %v149_v50 = vsel %vm148_vm7, %v484_v43, %v145_v49 }
  0xc2   :  { %v150_v51 = vmul.f32 %v149_v50, %v642_v48 }
  0xc4   :  { %v151_v52 = vmul.f32 %v150_v51, %v126_v34  ;;  %v156_v53 = vperm.slane %v150_v51, 0 }
  0xc6   :  { %v153_v54 = vrot.slane %v151_v52, 7  ;;  %v157_v56 = vmul.f32 %v156_v53, %v107_v13 }
  0xc8   :  { %v155_v55 = vsub.f32 %v642_v48, %v153_v54 }
  0xca   :  { %v158_v57 = vperm.slane %v155_v55, 1  ;;  %v472_v55 = vld [vmem:[#allocation6 + $0x58] sm:$0xff] }
  0xcb   :  { %386 = vmatpush.bf16.msra.mxu3 %v472_v55 }
  0xcc   :  { %v159_v58 = vadd.f32 %v158_v57, %v157_v56 }
  0xce   :  { %v160_v59 = vmax.f32 %v159_v58, 0.0 }
  0xd0   :  { %v161_v60 = vpack.c.bf16 %v160_v59, %v160_v59 }
  0xd2   :  { %425 = vmatmul.msk.bf16.vlgmr.msra.gmra.mxu1 %vm111_vm3, %v161_v60  ;;  %v471_v60 = vld [vmem:[#allocation6 + $0x50] sm:$0xff] }
  0xd3   :  { %387 = vmatpush.bf16.msra.mxu3 %v471_v60 }
 0x14f   :  { %v206_v61 = vpop.f32.mrf.mxu1 }
 0x150   :  { %v210_v62 = vsel %vm111_vm3, %v206_v61, 0.0  ;;  %v218_v63 = vmul.f32 %v206_v61, %v206_v61 }
 0x151   :  { %v211_v0 = vrot.slane %v210_v62, 4 }
 0x152   :  { %v219_v1 = vsel %vm111_vm3, %v218_v63, 0.0  ;;  %v470_v63 = vld [vmem:[#allocation6 + $0x48] sm:$0xff] }
 0x153   :  { %v212_v2 = vadd.f32 %v211_v0, %v210_v62  ;;  %v220_v3 = vrot.slane %v219_v1, 4  ;;  %388 = vmatpush.bf16.msra.mxu3 %v470_v63 }
 0x155   :  { %v213_v4 = vrot.slane %v212_v2, 2  ;;  %v221_v5 = vadd.f32 %v220_v3, %v219_v1  ;;  %v469_v3 = vld [vmem:[#allocation6 + $0x40] sm:$0xff] }
 0x157   :  { %v214_v6 = vadd.f32 %v213_v4, %v212_v2  ;;  %v222_v7 = vrot.slane %v221_v5, 2  ;;  %v208_v8 = vpop.f32.mrf.mxu1  ;;  %389 = vmatpush.bf16.msra.mxu3 %v469_v3 }
 0x159   :  { %v215_v10 = vrot.slane %v214_v6, 1  ;;  %v223_v11 = vadd.f32 %v222_v7, %v221_v5 }
 0x15b   :  { %v216_v12 = vadd.f32 %v215_v10, %v214_v6  ;;  %v224_v13 = vrot.slane %v223_v11, 1 }
 0x15d   :  { %v217_v15 = vmul.f32 %v216_v12, %v638_v30  ;;  %v225_v16 = vadd.f32 %v224_v13, %v223_v11 }
 0x15f   :  { %v226_v18 = vmul.f32 %v225_v16, %v638_v30  ;;  %v227_v19 = vmul.f32 %v217_v15, %v217_v15 }
 0x161   :  { %v228_v20 = vsub.f32 %v226_v18, %v227_v19 }
 0x163   :  { %v229_v22 = vmax.f32 %v228_v20, 0.0 }
 0x165   :  { %v230_v23 = vadd.f32 1e-05, %v229_v22  ;;  %v354_v22 = vperm.slane %v642_v48, 6 }
 0x167   :  { %485 = vrsqrt.f32 %v230_v23  ;;  %vm237_vm9 = vweird.f32 %v230_v23 }
 0x16d   :  { %v486_v24 = vpop.eup %485 }
 0x16e   :  { %v232_v25 = vmul.f32 %v486_v24, %v230_v23  ;;  %vm238_vm8 = vweird.f32 %v486_v24 }
 0x16f   :  { %vm239_vm10 = vmor %vm237_vm9, %vm238_vm8 }
 0x170   :  { %v233_v26 = vmul.f32 %v486_v24, %v232_v25 }
 0x172   :  { %v234_v27 = vmul.f32 0.5, %v233_v26 }
 0x174   :  { %v235_v28 = vsub.f32 1.5, %v234_v27 }
 0x176   :  { %v236_v29 = vmul.f32 %v486_v24, %v235_v28 }
 0x178   :  { %v240_v31 = vsel %vm239_vm10, %v486_v24, %v236_v29 }
 0x179   :  { %v241_v32 = vmul.f32 %v240_v31, %v642_v48 }
 0x17b   :  { %v242_v33 = vmul.f32 %v241_v32, %v217_v15  ;;  %v247_v34 = vperm.slane %v241_v32, 2 }
 0x17d   :  { %v244_v35 = vrot.slane %v242_v33, 7  ;;  %v248_v37 = vmul.f32 %v247_v34, %v206_v61 }
 0x17f   :  { %v246_v36 = vsub.f32 %v642_v48, %v244_v35 }
 0x181   :  { %v249_v38 = vperm.slane %v246_v36, 3 }
 0x183   :  { %v250_v39 = vadd.f32 %v249_v38, %v248_v37 }
 0x185   :  { %v251_v40 = vmax.f32 %v250_v39, 0.0 }
 0x187   :  { %v252_v41 = vpack.c.bf16 %v251_v40, %v251_v40 }
 0x189   :  { %442 = vmatmul.msk.bf16.vlgmr.msra.gmra.mxu2 %vm111_vm3, %v252_v41 }
 0x20c   :  { %v298_v42 = vpop.f32.mrf.mxu2 }
 0x20d   :  { %v302_v43 = vsel %vm111_vm3, %v298_v42, 0.0  ;;  %v310_v44 = vmul.f32 %v298_v42, %v298_v42 }
 0x20e   :  { %v303_v45 = vrot.slane %v302_v43, 4 }
 0x20f   :  { %v311_v46 = vsel %vm111_vm3, %v310_v44, 0.0 }
 0x210   :  { %v304_v47 = vadd.f32 %v303_v45, %v302_v43  ;;  %v312_v49 = vrot.slane %v311_v46, 4 }
 0x212   :  { %v305_v50 = vrot.slane %v304_v47, 2  ;;  %v313_v51 = vadd.f32 %v312_v49, %v311_v46 }
 0x214   :  { %v306_v52 = vadd.f32 %v305_v50, %v304_v47  ;;  %v314_v53 = vrot.slane %v313_v51, 2  ;;  %v300_v54 = vpop.f32.mrf.mxu2 }
 0x216   :  { %v307_v56 = vrot.slane %v306_v52, 1  ;;  %v315_v57 = vadd.f32 %v314_v53, %v313_v51 }
 0x218   :  { %v308_v58 = vadd.f32 %v307_v56, %v306_v52  ;;  %v316_v59 = vrot.slane %v315_v57, 1 }
 0x21a   :  { %v309_v61 = vmul.f32 %v308_v58, %v638_v30  ;;  %v317_v62 = vadd.f32 %v316_v59, %v315_v57 }
 0x21c   :  { %v318_v0 = vmul.f32 %v317_v62, %v638_v30  ;;  %v319_v1 = vmul.f32 %v309_v61, %v309_v61 }
 0x21e   :  { %v320_v2 = vsub.f32 %v318_v0, %v319_v1 }
 0x220   :  { %v321_v4 = vmax.f32 %v320_v2, 0.0 }
 0x222   :  { %v322_v5 = vadd.f32 1e-05, %v321_v4 }
 0x224   :  { %487 = vrsqrt.f32 %v322_v5  ;;  %vm329_vm12 = vweird.f32 %v322_v5 }
 0x22a   :  { %v488_v6 = vpop.eup %487 }
 0x22b   :  { %v324_v7 = vmul.f32 %v488_v6, %v322_v5  ;;  %vm330_vm11 = vweird.f32 %v488_v6 }
 0x22c   :  { %vm331_vm13 = vmor %vm329_vm12, %vm330_vm11 }
 0x22d   :  { %v325_v8 = vmul.f32 %v488_v6, %v324_v7 }
 0x22f   :  { %v326_v9 = vmul.f32 0.5, %v325_v8 }
 0x231   :  { %v327_v10 = vsub.f32 1.5, %v326_v9 }
 0x233   :  { %v328_v11 = vmul.f32 %v488_v6, %v327_v10 }
 0x235   :  { %v332_v12 = vsel %vm331_vm13, %v488_v6, %v328_v11 }
 0x236   :  { %v333_v30 = vmul.f32 %v332_v12, %v642_v48 }
 0x238   :  { %v334_v13 = vmul.f32 %v333_v30, %v309_v61  ;;  %v339_v14 = vperm.slane %v333_v30, 4 }
 0x23a   :  { %v336_v15 = vrot.slane %v334_v13, 7  ;;  %v340_v17 = vmul.f32 %v339_v14, %v298_v42 }
 0x23c   :  { %v338_v16 = vsub.f32 %v642_v48, %v336_v15 }
 0x23e   :  { %v341_v18 = vperm.slane %v338_v16, 5 }
 0x240   :  { %v342_v19 = vadd.f32 %v341_v18, %v340_v17 }
 0x242   :  { %v343_v20 = vmax.f32 %v342_v19, 0.0 }
 0x244   :  { %v344_v21 = vpack.c.bf16 %v343_v20, %v343_v20 }
 0x246   :  { %459 = vmatmul.msk.bf16.vlgmr.msra.gmra.mxu3 %vm111_vm3, %v344_v21 }
 0x2c9   :  { %v391_v23 = vpop.f32.mrf.mxu3 }
 0x2ca   :  { %v392_v24 = vadd.f32 %v391_v23, %v354_v22 }
 0x2cc   :  { %396 = vst.msk [vmem:[%s669_s4] sm:$0xff] %vm395_vm14, %v392_v24 }
 0x2d1   :  { %v393_v25 = vpop.f32.mrf.mxu3 }
 0x2d2   :  { %401 = vsyncpa [#allocation3], 1 }
 0x2d3   :  { %402 = vsyncpa [#allocation5], 1 }
 0x2d4   :  { %403 = vsyncpa [#allocation8], 1 }

</bundles_post_ra>
